<compile_context>
chip_gen: v7x
topology: tpu7x:2x2x1
jax: 0.10.0
libtpu: 0.0.40
codegen_flags: <defaults>
</compile_context>

<pallas_src>
import functools

import jax
import jax.numpy as jnp
from jax.experimental import pallas as pl
from jax.experimental.pallas import tpu as pltpu


def _cdiv(a, b):
    return -(-a // b)


# ---------------------------------------------------------------------------
# Fused kernel: whole image(s) per grid step (pool + gate + affine, one pass).
# ---------------------------------------------------------------------------
def lft_fused_kernel(w_ref, s_ref, x_ref, o_ref):
    # w_ref : (1, 2C) f32 conv weights [w_avg * (1/HW) | w_max]   (VMEM)
    # s_ref : (2,)    f32 [bias, sum(W)]                          (SMEM)
    # x_ref / o_ref : (bt, C, HW) native dtype, lane-dense last dim.
    xs = x_ref[...]                                      # keep native dtype
    c = xs.shape[1]

    # Pooling == full spatial reduction over the lane-dense last axis.
    row_sum = jnp.sum(xs, axis=-1, dtype=jnp.float32)    # (bt, C)
    row_max = jnp.max(xs, axis=-1).astype(jnp.float32)   # (bt, C)

    w = w_ref[...]                                       # (1, 2C) f32
    bias = s_ref[0]
    sum_w = s_ref[1]

    # 1x1 conv on concat([avg, max]) -> per-batch logit.  1/HW is pre-folded
    # into w[:, :C] so row_sum is used directly.  Kept on the VPU (a
    # (1,2C)x(2C,1) MXU call would only add drain latency for one scalar).
    logit = jnp.sum(row_sum * w[:, :c] + row_max * w[:, c:], axis=-1,
                    keepdims=True) + bias                # (bt, 1)

    A = jax.nn.sigmoid(logit)                            # (bt, 1)  (EUP)
    mask = (logit > 0.0).astype(jnp.float32)             # == (A > 0.5)

    # gamma == beta == conv(A broadcast to 2C channels) = A * sum(W) + bias
    gb = A * sum_w + bias                                # (bt, 1)

    # TODO(synk): for bf16 x the per-batch scalars are cast to bf16 before the
    # fused multiply-add (the reference computes in f32); exact for f32.
    scale = (mask * gb).astype(xs.dtype)                 # (bt, 1)
    offs = gb.astype(xs.dtype)                           # (bt, 1)

    o_ref[...] = (xs * scale[:, :, None] + offs[:, :, None]).astype(o_ref.dtype)


# ---------------------------------------------------------------------------
# Chunked fallback (huge single images): pass 1 pooling, pass 2 apply.
# ---------------------------------------------------------------------------
def lft_pool_kernel(x_ref, sum_ref, max_ref, *, hw, chunk):
    # x_ref : (1, C, chunk) native dtype; sum_ref/max_ref : (1, 1, C) f32
    # accumulators resident across the (arbitrary) chunk grid axis.
    s = pl.program_id(1)
    xs = x_ref[...].astype(jnp.float32)                  # (1, C, chunk)
    lane = jax.lax.broadcasted_iota(jnp.int32, xs.shape, 2)
    valid = (s * chunk + lane) < hw                      # mask edge-chunk pad
    psum = jnp.sum(jnp.where(valid, xs, 0.0), axis=-1)   # (1, C)
    pmax = jnp.max(jnp.where(valid, xs, -jnp.inf), axis=-1)

    @pl.when(s == 0)
    def _():
        sum_ref[...] = psum[:, None, :]
        max_ref[...] = pmax[:, None, :]

    @pl.when(s != 0)
    def _():
        sum_ref[...] = sum_ref[...] + psum[:, None, :]
        max_ref[...] = jnp.maximum(max_ref[...], pmax[:, None, :])


def lft_apply_kernel(scale_ref, offs_ref, x_ref, o_ref):
    # scale_ref / offs_ref : (B,) f32 in SMEM; x_ref / o_ref : (1, C, chunk).
    b = pl.program_id(0)
    xs = x_ref[...]
    sc = scale_ref[b].astype(xs.dtype)
    of = offs_ref[b].astype(xs.dtype)
    o_ref[...] = (xs * sc + of).astype(o_ref.dtype)


# ---------------------------------------------------------------------------
# Chip-aware tiling policy.
# ---------------------------------------------------------------------------
def _chip_caps():
    """(physical VMEM bytes, TensorCores per chip) with safe fallbacks."""
    vmem = 128 * 1024 * 1024
    try:
        info = pltpu.get_tpu_info()
        vmem = int(getattr(info, "vmem_capacity_bytes", vmem))
    except Exception:
        pass
    cores = 1
    try:
        kind = jax.devices()[0].device_kind.lower()
        if ("v7" in kind) or ("v4" in kind) or ("v5p" in kind):
            cores = 2                       # dual-TC / megacore chips
    except Exception:
        pass
    return vmem, cores


def _choose_batch_tile(batch, per_image_bytes, *, block_cap_bytes, num_cores):
    """Batch rows per grid step.

    No divisibility requirement (wrapper launches grid=cdiv(B, bt)).  1-TC
    chips: largest block under the cap.  Multi-TC chips: at least one step per
    core, and prefer >=2 steps per core for DMA pipelining as long as blocks
    stay >= ~512 KiB.
    """
    bt = max(1, min(batch, block_cap_bytes // max(per_image_bytes, 1)))
    if num_cores > 1 and batch > 1:
        bt = min(bt, _cdiv(batch, num_cores))            # >= 1 step per core
        min_block = 512 * 1024
        while (_cdiv(batch, bt) < 2 * num_cores and bt > 1
               and (bt // 2) * per_image_bytes >= min_block):
            bt //= 2
    return bt


# ---------------------------------------------------------------------------
# Wrapper.
# ---------------------------------------------------------------------------
@jax.jit
def lft_forward(x, conv_w, conv_b):
    B, C, H, W = x.shape
    HW = H * W
    itemsize = jnp.dtype(x.dtype).itemsize

    vmem_phys, num_cores = _chip_caps()
    vmem_budget = max(8 << 20, int(0.75 * vmem_phys))   # ~48 MiB v7x, ~96 MiB v5e/v6e
    block_cap = (4 << 20) if vmem_phys > (64 << 20) else (2 << 20)

    # Lane-dense layout: NCHW is contiguous, so (B, C, H*W) is a free reshape.
    # TODO(synk): when HW % 128 != 0 the output stores are masked (vst.msk); a
    # lane-dense repack (e.g. a (B, C*HW) slab) would avoid that.
    x3 = x.reshape(B, C, HW)

    # Conv params: (1, 2C, 1, 1) -> (1, 2C); pre-fold 1/HW into the avg half.
    wflat = conv_w.reshape(2 * C).astype(jnp.float32)
    w2 = jnp.concatenate([wflat[:C] * jnp.float32(1.0 / HW), wflat[C:]])
    w2 = w2.reshape(1, 2 * C)
    bias = conv_b.reshape(()).astype(jnp.float32)
    sum_w = jnp.sum(wflat)
    scalars = jnp.stack([bias, sum_w])                   # (2,) f32 -> SMEM

    # VMEM accounting with the sublane-padded channel count (f32->8, bf16->16).
    # TODO(synk): for C far below the sublane packing, a (B*C, HW) flattened
    # layout would pack sublanes and halve the per-block VMEM footprint.
    sublane = 8 * max(1, 4 // itemsize)
    c_pad = _cdiv(C, sublane) * sublane
    per_image = c_pad * HW * itemsize

    fused_fits = (6 * per_image + (4 << 20)) <= vmem_budget

    if fused_fits:
        bt = _choose_batch_tile(B, per_image, block_cap_bytes=block_cap,
                                num_cores=num_cores)
        n_steps = _cdiv(B, bt)
        block_bytes = bt * per_image
        vmem_limit = int(min(vmem_budget,
                             max(8 << 20, 6 * block_bytes + (4 << 20))))

        x_map = lambda b: (b, 0, 0)
        if n_steps >= 4 and block_bytes < (512 << 10):
            # Tiny blocks that cannot be grown: keep more DMAs in flight.
            x_spec = pl.BlockSpec((bt, C, HW), x_map,
                                  pipeline_mode=pl.Buffered(3))
        else:
            x_spec = pl.BlockSpec((bt, C, HW), x_map)

        out3 = pl.pallas_call(
            lft_fused_kernel,
            out_shape=jax.ShapeDtypeStruct((B, C, HW), x.dtype),
            grid_spec=pltpu.PrefetchScalarGridSpec(
                num_scalar_prefetch=0,
                grid=(n_steps,),
                in_specs=[
                    pl.BlockSpec((1, 2 * C), lambda b: (0, 0)),
                    pl.BlockSpec(memory_space=pltpu.MemorySpace.SMEM),
                    x_spec,
                ],
                out_specs=pl.BlockSpec((bt, C, HW), x_map),
            ),
            compiler_params=pltpu.CompilerParams(
                dimension_semantics=("parallel",),
                vmem_limit_bytes=vmem_limit,
            ),
        )(w2, scalars, x3)
        return out3.reshape(B, C, H, W)

    # ----- chunked fallback: a single image is too large for the fused path --
    lanes = max(128, (block_cap // max(c_pad * itemsize, 1)) // 128 * 128)
    chunk = min(lanes, _cdiv(HW, 128) * 128)
    ns = _cdiv(HW, chunk)
    chunk_bytes = c_pad * chunk * itemsize
    vmem_limit = int(min(vmem_budget, max(8 << 20, 5 * chunk_bytes + (4 << 20))))

    # Pass 1: chunked avg/max pooling with resident (1,1,C) accumulators.
    sums, maxs = pl.pallas_call(
        functools.partial(lft_pool_kernel, hw=HW, chunk=chunk),
        out_shape=(jax.ShapeDtypeStruct((B, 1, C), jnp.float32),
                   jax.ShapeDtypeStruct((B, 1, C), jnp.float32)),
        grid_spec=pltpu.PrefetchScalarGridSpec(
            num_scalar_prefetch=0,
            grid=(B, ns),
            in_specs=[pl.BlockSpec((1, C, chunk), lambda b, s: (b, 0, s))],
            out_specs=(pl.BlockSpec((1, 1, C), lambda b, s: (b, 0, 0)),
                       pl.BlockSpec((1, 1, C), lambda b, s: (b, 0, 0))),
        ),
        compiler_params=pltpu.CompilerParams(
            dimension_semantics=("parallel", "arbitrary"),
            vmem_limit_bytes=vmem_limit,
        ),
    )(x3)

    # Tiny per-batch gate math (B scalars) stays in plain JAX.
    avg = sums.reshape(B, C) * jnp.float32(1.0 / HW)
    mx = maxs.reshape(B, C)
    logit = avg @ wflat[:C] + mx @ wflat[C:] + bias       # (B,)
    A = jax.nn.sigmoid(logit)
    gb = A * sum_w + bias
    scale = jnp.where(logit > 0.0, gb, 0.0).astype(jnp.float32)
    offs = gb.astype(jnp.float32)

    # Pass 2: elementwise apply, streaming each image in spatial chunks.
    out3 = pl.pallas_call(
        lft_apply_kernel,
        out_shape=jax.ShapeDtypeStruct((B, C, HW), x.dtype),
        grid_spec=pltpu.PrefetchScalarGridSpec(
            num_scalar_prefetch=0,
            grid=(B, ns),
            in_specs=[
                pl.BlockSpec(memory_space=pltpu.MemorySpace.SMEM),
                pl.BlockSpec(memory_space=pltpu.MemorySpace.SMEM),
                pl.BlockSpec((1, C, chunk), lambda b, s: (b, 0, s)),
            ],
            out_specs=pl.BlockSpec((1, C, chunk), lambda b, s: (b, 0, s)),
        ),
        compiler_params=pltpu.CompilerParams(
            dimension_semantics=("parallel", "parallel"),
            vmem_limit_bytes=vmem_limit,
        ),
    )(scale, offs, x3)
    return out3.reshape(B, C, H, W)


def lft_reference(x, conv_w, conv_b):
    """Pure-JAX reference with the same interpretation."""
    B, C, H, W = x.shape
    wflat = conv_w.reshape(2 * C)
    bias = conv_b.reshape(())
    avg = x.mean(axis=(2, 3))                       # (B, C)
    mx = x.max(axis=(2, 3))                         # (B, C)
    comb = jnp.concatenate([avg, mx], axis=1)       # (B, 2C)
    A = jax.nn.sigmoid(comb @ wflat + bias)         # (B,)
    mask = (A > 0.5).astype(jnp.float32)
    gb = A * wflat.sum() + bias                     # gamma == beta
    return (x * (mask * gb)[:, None, None, None]
            + gb[:, None, None, None])


if __name__ == "__main__":
    B, C, H, W = 2, 4, 16, 16

    key = jax.random.PRNGKey(0)
    kx, kw, kb = jax.random.split(key, 3)

    x = jax.random.normal(kx, (B, C, H, W), dtype=jnp.float32)
    # Conv2d(2C, 1, kernel_size=1): weight (1, 2C, 1, 1), bias (1,)
    conv_w = 0.1 * jax.random.normal(kw, (1, 2 * C, 1, 1), dtype=jnp.float32)
    conv_b = 0.1 * jax.random.normal(kb, (1,), dtype=jnp.float32)

    out = lft_forward(x, conv_w, conv_b)
    out = jax.block_until_ready(out)

    ref = lft_reference(x, conv_w, conv_b)
    assert out.shape == (B, C, H, W)
    assert jnp.allclose(out, ref, atol=1e-5, rtol=1e-5), "mismatch vs reference"

    print("KERNEL_OK")
</pallas_src>

<mosaic_0001>
module attributes {stable_mosaic.version = 11 : i64} {
  func.func @lft_fused_kernel(%arg0: i32, %arg1: memref<1x8xf32, #tpu.memory_space<vmem>>, %arg2: memref<2xf32, #tpu.memory_space<smem>>, %arg3: memref<2x4x256xf32, #tpu.memory_space<vmem>>, %arg4: memref<2x4x256xf32, #tpu.memory_space<vmem>>) attributes {dimension_semantics = [#tpu.dimension_semantics<parallel>], iteration_bounds = array<i64: 1>, scalar_prefetch = 0 : i64, scratch_operands = 0 : i64, tpu.core_type = #tpu.core_type<tc>, window_params = [{pipeline_mode = #tpu.pipeline_mode<synchronous>, transform_indices = @transform_0, window_bounds = array<i64: 1, 8>}, {transform_indices = @transform_1, window_bounds = array<i64: 2>}, {transform_indices = @transform_2, window_bounds = array<i64: 2, 4, 256>}, {transform_indices = @transform_3, window_bounds = array<i64: 2, 4, 256>}]} {
    %c0 = arith.constant 0 : index
    %c0_0 = arith.constant 0 : index
    %c0_1 = arith.constant 0 : index
    %0 = vector.load %arg3[%c0, %c0_0, %c0_1] : memref<2x4x256xf32, #tpu.memory_space<vmem>>, vector<2x4x256xf32>
    %cst = arith.constant dense<0.000000e+00> : vector<2x4xf32>
    %1 = vector.multi_reduction <add>, %0, %cst [2] : vector<2x4x256xf32> to vector<2x4xf32>
    %cst_2 = arith.constant dense<0xFF800000> : vector<2x4xf32>
    %2 = vector.multi_reduction <maximumf>, %0, %cst_2 [2] : vector<2x4x256xf32> to vector<2x4xf32>
    %c0_3 = arith.constant 0 : index
    %c0_4 = arith.constant 0 : index
    %3 = vector.load %arg1[%c0_3, %c0_4] : memref<1x8xf32, #tpu.memory_space<vmem>>, vector<1x8xf32>
    %c0_5 = arith.constant 0 : index
    %4 = memref.load %arg2[%c0_5] : memref<2xf32, #tpu.memory_space<smem>>
    %c1 = arith.constant 1 : index
    %5 = memref.load %arg2[%c1] : memref<2xf32, #tpu.memory_space<smem>>
    %6 = vector.extract_strided_slice %3 {offsets = [0, 0], sizes = [1, 4], strides = [1, 1]} : vector<1x8xf32> to vector<1x4xf32>
    %7 = vector.broadcast %6 : vector<1x4xf32> to vector<2x4xf32>
    %8 = arith.mulf %1, %7 : vector<2x4xf32>
    %9 = vector.extract_strided_slice %3 {offsets = [0, 4], sizes = [1, 4], strides = [1, 1]} : vector<1x8xf32> to vector<1x4xf32>
    %10 = vector.broadcast %9 : vector<1x4xf32> to vector<2x4xf32>
    %11 = arith.mulf %2, %10 : vector<2x4xf32>
    %12 = arith.addf %8, %11 : vector<2x4xf32>
    %cst_6 = arith.constant dense<0.000000e+00> : vector<2xf32>
    %13 = vector.multi_reduction <add>, %12, %cst_6 [1] : vector<2x4xf32> to vector<2xf32>
    %14 = vector.shape_cast %13 : vector<2xf32> to vector<2x1xf32>
    %15 = vector.broadcast %4 : f32 to vector<2x1xf32>
    %16 = arith.addf %14, %15 : vector<2x1xf32>
    %17 = arith.negf %16 : vector<2x1xf32>
    %18 = math.exp %17 : vector<2x1xf32>
    %cst_7 = arith.constant 1.000000e+00 : f32
    %19 = vector.broadcast %cst_7 : f32 to vector<2x1xf32>
    %20 = arith.addf %19, %18 : vector<2x1xf32>
    %21 = arith.divf %19, %20 : vector<2x1xf32>
    %cst_8 = arith.constant 0.000000e+00 : f32
    %22 = vector.broadcast %cst_8 : f32 to vector<2x1xf32>
    %23 = arith.cmpf ogt, %16, %22 : vector<2x1xf32>
    %24 = arith.extui %23 : vector<2x1xi1> to vector<2x1xi32>
    %25 = arith.sitofp %24 : vector<2x1xi32> to vector<2x1xf32>
    %26 = vector.broadcast %5 : f32 to vector<2x1xf32>
    %27 = arith.mulf %21, %26 : vector<2x1xf32>
    %28 = vector.broadcast %4 : f32 to vector<2x1xf32>
    %29 = arith.addf %27, %28 : vector<2x1xf32>
    %30 = arith.mulf %25, %29 : vector<2x1xf32>
    %31 = vector.shape_cast %30 : vector<2x1xf32> to vector<2x1x1xf32>
    %32 = vector.broadcast %31 : vector<2x1x1xf32> to vector<2x4x256xf32>
    %33 = arith.mulf %0, %32 : vector<2x4x256xf32>
    %34 = vector.shape_cast %29 : vector<2x1xf32> to vector<2x1x1xf32>
    %35 = vector.broadcast %34 : vector<2x1x1xf32> to vector<2x4x256xf32>
    %36 = arith.addf %33, %35 : vector<2x4x256xf32>
    %c0_9 = arith.constant 0 : index
    %c0_10 = arith.constant 0 : index
    %c0_11 = arith.constant 0 : index
    %37 = vector.load %arg4[%c0_9, %c0_10, %c0_11] : memref<2x4x256xf32, #tpu.memory_space<vmem>>, vector<2x4x256xf32>
    tpu.vector_store %arg4[%c0_9, %c0_10, %c0_11], %36 {strides = array<i32>} : memref<2x4x256xf32, #tpu.memory_space<vmem>>, vector<2x4x256xf32>,
    return
  }
  func.func @transform_0(%arg0: i32) -> (i32, i32) {
    %c0_i32 = arith.constant 0 : i32
    %c0_i32_0 = arith.constant 0 : i32
    %c0_i32_1 = arith.constant 0 : i32
    return %c0_i32, %c0_i32_0 : i32, i32
  }
  func.func @transform_1(%arg0: i32) -> i32 {
    %c0_i32 = arith.constant 0 : i32
    %c0_i32_0 = arith.constant 0 : i32
    return %c0_i32 : i32
  }
  func.func @transform_2(%arg0: i32) -> (i32, i32, i32) {
    %c0_i32 = arith.constant 0 : i32
    %c0_i32_0 = arith.constant 0 : i32
    %c0_i32_1 = arith.constant 0 : i32
    return %arg0, %c0_i32, %c0_i32_0 : i32, i32, i32
  }
  func.func @transform_3(%arg0: i32) -> (i32, i32, i32) {
    %c0_i32 = arith.constant 0 : i32
    %c0_i32_0 = arith.constant 0 : i32
    %c0_i32_1 = arith.constant 0 : i32
    return %arg0, %c0_i32, %c0_i32_0 : i32, i32, i32
  }
}

</mosaic_0001>

<bundles_post_ra>
// kernel: lft_forward.1
= control target key start
LH: loop header
LB: loop body
LE: loop exit
PB: predicated region body
PF: predicated region fallthrough
CT: control target
= control target key end

     0   :  { %8 = vsyncpa [#allocation3], 0  ;;  %s236_s0 = inlined_call_operand.vmem [shape: f32[1,8], index: 0, kind: input, shape index: {}]   ;;  %s237_s1 = inlined_call_operand.vmem [shape: f32[2], index: 1, kind: input, shape index: {}]   ;;  %s238_s2 = inlined_call_operand.vmem [shape: f32[2,4,256], index: 2, kind: input, shape index: {}]   ;;  %s239_s3 = inlined_call_operand.vmem [shape: f32[2,4,256], index: 3, kind: output, shape index: {}]  }
   0x1   :  { %s17_s14 = sshll.u32 %s237_s1, 4  ;;  %s18_s14 = int_to_ptr.vmem [resolvable:$true] %s17_s14 }
   0x2   :  { %s167_s15 = scalar_lea.vmem %s18_s14, 16  ;;  %p172_p1 = scmp.lt.s32.totalorder %s18_s14, %s18_s14 }
   0x3   :  { %p168_p0 = scmp.ne.s32.totalorder %s18_s14, %s167_s15  ;;  %p173_p2 = scmp.lt.s32.totalorder %s167_s15, %s167_s15 }
   0x5   :  { %p174_p3 = por %p173_p2, %p172_p1 }
   0x7   :  { %p175_p4 = pnand %p174_p3, %p168_p0 }
   0x9   :  { %178 = shalt.err (!%p175_p4)
}
   0xa   :  { %s181_s16 = smov [#allocation2]  }
   0xb   :  { %20 = dma.vmem_to_smem %s18_s14, 16, %s181_s16, [#allocation3]  }
   0xc   :  { %179 = dma.done.wait [#allocation3], 16  }
   0xd   :  { %180 = vsyncadd [#allocation3], 4294967280 }
   0xe   :  { %26 = sfence }
   0xf   :  { %v210_v0 = vld [vmem:[%s238_s2] sm:$0xff]  ;;  %vm35_vm0 = vcmask 1043456   ;;  %v215_v1 = vld [vmem:[%s238_s2 + $0x8] sm:$0xff]  ;;  %v182_v17 = vmov 0   ;;  %v87_v30 = vlaneseq  ;;  %vm97_vm1 = vcmask 1041409   ;;  %s152_s21 = sld [smem:[#allocation2 + $0x1]] }
  0x10   :  { %v31_v2 = vcombine.high %v210_v0, %v210_v0  ;;  %v46_v3 = vsel %vm35_vm0, %v210_v0, -inf  ;;  %v36_v4 = vsel %vm35_vm0, %v210_v0, 0.0  ;;  %v32_v5 = vcombine.high %v215_v1, %v215_v1  ;;  %v153_v16 = vld [vmem:[%s236_s0] ss:$0 sm:$0xff]  ;;  %159 = vset.pattern.permute.xlu1 %v182_v17  ;;  %160 = vset.pattern.permute.xlu0 %v182_v17  ;;  %s57_s0 = sld [smem:[#allocation2]] }
  0x11   :  { %v51_v6 = vsel %vm35_vm0, %v215_v1, -inf  ;;  %v41_v7 = vsel %vm35_vm0, %v215_v1, 0.0  ;;  %v88_v31 = vand.u32 127, %v87_v30  ;;  %v90_v32 = vshrl.u32 %v87_v30, 7 }
  0x12   :  { %v47_v8 = vsel %vm35_vm0, %v31_v2, -inf  ;;  %v37_v9 = vsel %vm35_vm0, %v31_v2, 0.0  ;;  %v52_v10 = vsel %vm35_vm0, %v32_v5, -inf  ;;  %v42_v11 = vsel %vm35_vm0, %v32_v5, 0.0 }
  0x13   :  { %v48_v12 = vmax.f32 %v46_v3, %v47_v8  ;;  %v38_v13 = vadd.f32 %v37_v9, %v36_v4  ;;  %v53_v14 = vmax.f32 %v51_v6, %v52_v10  ;;  %v43_v15 = vadd.f32 %v42_v11, %v41_v7 }
  0x14   :  { %v91_v34 = vsub.s32 %v88_v31, %v90_v32  ;;  %vm100_vm2 = vcmask 25600   ;;  %v183_v50 = vmov 0.0   ;;  %v122_v52 = vsub.s32 0, %v90_v32 }
  0x15   :  { %49 = vmax.xlane.f32.xlu1 %v48_v12  ;;  %39 = vadd.xlane.f32.xlu0 %v38_v13  ;;  %v115_v46 = vstv %s152_s21  ;;  %v126_v53 = vsub.s32 1, %v90_v32 }
  0x16   :  { %v104_v40 = vstv %s57_s0 }
  0x19   :  { %54 = vmax.xlane.f32.xlu1 %v53_v14  ;;  %44 = vadd.xlane.f32.xlu0 %v43_v15 }
  0x2a   :  { %72 = vbcast.lane.b32.xlu1 %v153_v16, 260 }
  0x2f   :  { %65 = vbcast.lane.b32.xlu0 %v153_v16, 256 }
  0xa2   :  { %v50_v18 = vpop.xlane.xlu1 %49  ;;  %v40_v19 = vpop.xlane.xlu0 %39 }
  0xa6   :  { %v55_v20 = vpop.xlane.xlu1 %54  ;;  %v45_v21 = vpop.xlane.xlu0 %44 }
  0xaa   :  { %v73_v22 = vpop.permute.xlu1 %72  ;;  %v66_v23 = vpop.permute.xlu0 %65 }
  0xab   :  { %v75_v24 = vmul.f32 %v73_v22, %v50_v18  ;;  %v68_v25 = vmul.f32 %v66_v23, %v40_v19  ;;  %v76_v26 = vmul.f32 %v73_v22, %v55_v20  ;;  %v69_v27 = vmul.f32 %v66_v23, %v45_v21 }
  0xad   :  { %v77_v28 = vadd.f32 %v75_v24, %v68_v25  ;;  %v78_v29 = vadd.f32 %v76_v26, %v69_v27 }
  0xaf   :  { %82 = vperm.xlu1 %159, %v77_v28  }
  0xb3   :  { %85 = vperm.xlu1 %159, %v78_v29  }
 0x12e   :  { %v83_v33 = vpop.permute.xlu1 %82 }
 0x12f   :  { %v92_v36 = vrot.slane %v83_v33, %v91_v34 }
 0x132   :  { %v86_v35 = vpop.permute.xlu1 %85 }
 0x133   :  { %v96_v37 = vrot.slane %v86_v35, %v91_v34 }
 0x135   :  { %v98_v38 = vsel %vm97_vm1, %v96_v37, %v92_v36 }
 0x136   :  { %v101_v39 = vsel %vm100_vm2, %v98_v38, 0.0 }
 0x137   :  { %102 = vadd.xlane.f32.xlu0 %v101_v39 }
 0x1c4   :  { %v103_v41 = vpop.xlane.xlu0 %102 }
 0x1c5   :  { %v105_v42 = vadd.f32 %v104_v40, %v103_v41 }
 0x1c7   :  { %v154_v43 = vmul.f32 -1.442695, %v105_v42  ;;  %vm112_vm3 = vcmp.gt.f32.partialorder %v105_v42, 0.0 }
 0x1c8   :  { %v155_v51 = vsel %vm112_vm3, 1.0, %v183_v50 }
 0x1c9   :  { %163 = vpow2.f32 %v154_v43 }
 0x1d3   :  { %v164_v44 = vpop.eup %163 }
 0x1d4   :  { %v109_v45 = vadd.f32 1.0, %v164_v44 }
 0x1d6   :  { %165 = vrcp.f32 %v109_v45 }
 0x1e0   :  { %v166_v47 = vpop.eup %165 }
 0x1e1   :  { %v116_v48 = vmul.f32 %v166_v47, %v115_v46 }
 0x1e3   :  { %v117_v49 = vadd.f32 %v116_v48, %v104_v40 }
 0x1e5   :  { %v118_v54 = vmul.f32 %v155_v51, %v117_v49  ;;  %v136_v59 = vrot.slane %v117_v49, %v122_v52  ;;  %v140_v60 = vrot.slane %v117_v49, %v126_v53 }
 0x1e7   :  { %v123_v55 = vrot.slane %v118_v54, %v122_v52  ;;  %v127_v56 = vrot.slane %v118_v54, %v126_v53 }
 0x1e9   :  { %v130_v57 = vmul.f32 %v123_v55, %v210_v0  ;;  %v131_v58 = vmul.f32 %v127_v56, %v215_v1 }
 0x1eb   :  { %v143_v61 = vadd.f32 %v136_v59, %v130_v57  ;;  %v144_v62 = vadd.f32 %v140_v60, %v131_v58 }
 0x1ed   :  { %145 = vst [vmem:[%s239_s3] sm:$0xff] %v143_v61  ;;  %146 = vst [vmem:[%s239_s3 + $0x8] sm:$0xff] %v144_v62 }
 0x1ee   :  { %151 = vsyncpa [#allocation3], 1 }

</bundles_post_ra>
